<compile_context>
chip_gen: v7x
topology: tpu7x:2x2x1
jax: 0.10.0
libtpu: 0.0.40
codegen_flags: <defaults>
</compile_context>

<pallas_src>
import functools

import jax
import jax.numpy as jnp
from jax.experimental import pallas as pl
from jax.experimental.pallas import tpu as pltpu

DEFAULT_BLOCK_M = 1024   # token tile (upper bound; balanced / shrunk per call)
DEFAULT_BLOCK_I = 1280   # max intermediate-dim chunk width


def _round_up(n: int, m: int) -> int:
    return (n + m - 1) // m * m


def _cdiv(a: int, b: int) -> int:
    return -(-a // b)


def _vmem_capacity_bytes() -> int:
    """Per-TensorCore VMEM capacity; conservative 64 MiB (v7x) fallback."""
    try:
        cap = getattr(pltpu.get_tpu_info(), "vmem_capacity_bytes", None)
        if cap:
            return int(cap)
    except Exception:
        pass
    return 64 * 1024 * 1024


def _mlp_kernel(x_ref, wgu_ref, bgu_ref, wd_ref, bd_ref, o_ref, acc_ref, *,
                w_resident: bool):
    """One (token-tile, I-chunk) step of the SwiGLU MLP.

    w_resident=True : wgu_ref/wd_ref hold ALL chunks resident in VMEM
                      (constant index_map -> single HBM fetch per call);
                      chunk j is selected with a dynamic leading-dim index.
    w_resident=False: wgu_ref/wd_ref hold only the current chunk (streamed).
    """
    j = pl.program_id(1)

    @pl.when(j == 0)
    def _():
        acc_ref[...] = jnp.zeros_like(acc_ref)

    widx = j if w_resident else 0

    # Fused gate/up matmul: bf16 x bf16 -> f32 accumulation on the MXU.
    x = x_ref[...]                                       # (tm, H), compute dtype
    gu = jnp.dot(x, wgu_ref[widx], preferred_element_type=jnp.float32)
    gu = gu + bgu_ref[j].astype(jnp.float32)             # (tm, 2*ic), f32 epilogue

    ic = gu.shape[-1] // 2
    gate = gu[:, :ic]
    up = gu[:, ic:]
    # SiluAndMul: silu(g) * u = g * sigmoid(g) * u   (sigmoid -> EUP)
    h = gate * jax.lax.logistic(gate) * up               # f32

    # Down-projection for this chunk, accumulated into the f32 VMEM scratch.
    acc_ref[...] += jnp.dot(h.astype(wd_ref.dtype), wd_ref[widx],
                            preferred_element_type=jnp.float32)

    @pl.when(j == pl.num_programs(1) - 1)
    def _():
        o_ref[...] = (acc_ref[...] + bd_ref[...].astype(jnp.float32)
                      ).astype(o_ref.dtype)


def prepare_qwen2_5_vl_mlp_params(w_gate_up, b_gate_up, w_down, b_down, *,
                                  block_i: int = DEFAULT_BLOCK_I,
                                  compute_dtype=jnp.bfloat16):
    """One-time weight prep (call at weight-load time, NOT per forward call).

    Args (PyTorch (out_features, in_features) layout):
      w_gate_up: (2*I, H), b_gate_up: (2*I,), w_down: (H, I), b_down: (H,)
    Returns:
      wgu: (nC, H, 2*ic)  fused gate/up chunks, compute_dtype
      bgu: (nC, 1, 2*ic)  fused gate/up bias chunks, f32
      wd:  (nC, ic, H)    down-proj chunks, compute_dtype
      bd:  (1, H)         down-proj bias, f32
    """
    I2, H = w_gate_up.shape
    I = I2 // 2
    assert w_down.shape == (H, I)

    # Chunking: minimize I padding (ic = round_up(ceil(I / n_chunks), 128)).
    if I <= block_i:
        n_chunks, ic = 1, I
    else:
        n_chunks = _cdiv(I, block_i)
        ic = _round_up(_cdiv(I, n_chunks), 128)
    I_pad = n_chunks * ic
    pad = I_pad - I

    wg = jnp.transpose(w_gate_up[:I, :])   # (H, I) -> (in, out)
    wu = jnp.transpose(w_gate_up[I:, :])   # (H, I)
    wd = jnp.transpose(w_down)             # (I, H)
    bg = b_gate_up[:I]
    bu = b_gate_up[I:]

    if pad:
        wg = jnp.pad(wg, ((0, 0), (0, pad)))
        wu = jnp.pad(wu, ((0, 0), (0, pad)))
        wd = jnp.pad(wd, ((0, pad), (0, 0)))
        bg = jnp.pad(bg, (0, pad))
        bu = jnp.pad(bu, (0, pad))

    # Fuse gate/up per chunk: chunk j = [wg[:, j*ic:(j+1)*ic] | wu[:, j*ic:(j+1)*ic]].
    wg = wg.reshape(H, n_chunks, ic)
    wu = wu.reshape(H, n_chunks, ic)
    wgu = jnp.transpose(jnp.concatenate([wg, wu], axis=-1), (1, 0, 2))
    wgu = wgu.astype(compute_dtype)                           # (nC, H, 2*ic)

    bgu = jnp.concatenate([bg.reshape(n_chunks, 1, ic),
                           bu.reshape(n_chunks, 1, ic)], axis=-1)
    bgu = bgu.astype(jnp.float32)                             # (nC, 1, 2*ic)

    wd = wd.reshape(n_chunks, ic, H).astype(compute_dtype)    # (nC, ic, H)
    bd = b_down.reshape(1, H).astype(jnp.float32)             # (1, H)
    return wgu, bgu, wd, bd


def qwen2_5_vl_mlp(x, wgu, bgu, wd, bd, *, block_m: int = DEFAULT_BLOCK_M,
                   _force_streamed: bool = False):
    """Forward pass.  x: (S, H); weight params from prepare_qwen2_5_vl_mlp_params."""
    S, H = x.shape
    n_chunks, _, ic2 = wgu.shape
    ic = ic2 // 2
    compute_dtype = wgu.dtype
    out_dtype = x.dtype
    cds = jnp.dtype(compute_dtype).itemsize
    ods = jnp.dtype(out_dtype).itemsize

    w_bytes = int((wgu.size + wd.size) * cds)            # prepared weight bytes
    b_bytes = int(bgu.size * 4 + bd.size * 4)

    vmem_cap = _vmem_capacity_bytes()
    margin = 4 << 20

    # --- Token tiling: balanced tiles; >=2 tiles for long sequences so both
    #     v7x TensorCores get work on the "parallel" axis.
    n_tiles = max(_cdiv(S, block_m), 1)
    if S >= 256:
        n_tiles = max(n_tiles, 2)
    tm = _round_up(_cdiv(S, n_tiles), 16)

    def vmem_est(tm_: int, resident: bool) -> int:
        # Weight buffers (assume default double-buffered allocation; when the
        # index_map is constant only one HBM fetch actually happens).
        wbuf = 2 * w_bytes if resident else 2 * (H * 2 * ic + ic * H) * cds
        tiles = 2 * tm_ * H * (cds + ods)                 # x / out, double-buffered
        acc = tm_ * H * 4                                 # f32 accumulator scratch
        temps = 3 * tm_ * 2 * ic * 4                      # f32 epilogue temporaries
        return wbuf + 2 * b_bytes + tiles + acc + temps

    resident = (not _force_streamed) and (vmem_est(tm, True) + margin <= vmem_cap)
    if not resident:
        # Shrink the token tile until the streamed footprint fits (64 MiB parts).
        while tm > 32 and vmem_est(tm, False) + margin > vmem_cap:
            tm = _round_up(tm // 2, 16)
        if not _force_streamed:
            resident = vmem_est(tm, True) + margin <= vmem_cap

    S_pad = _round_up(S, tm)
    grid = (S_pad // tm, n_chunks)

    xc = x.astype(compute_dtype)
    if S_pad != S:
        xc = jnp.pad(xc, ((0, S_pad - S), (0, 0)))

    if resident:
        # Full weight arrays resident in VMEM: constant index_map -> fetched once.
        wgu_spec = pl.BlockSpec((n_chunks, H, 2 * ic), lambda i, j: (0, 0, 0))
        wd_spec = pl.BlockSpec((n_chunks, ic, H), lambda i, j: (0, 0, 0))
    else:
        # Streamed fallback: one chunk per grid step (re-streamed per token tile).
        wgu_spec = pl.BlockSpec((1, H, 2 * ic), lambda i, j: (j, 0, 0))
        wd_spec = pl.BlockSpec((1, ic, H), lambda i, j: (j, 0, 0))

    vmem_limit = int(min(vmem_cap - (1 << 20),
                         max(vmem_est(tm, resident) + (8 << 20), 32 << 20)))

    weight_passes = 1 if resident else grid[0]
    flops = 6 * S_pad * H * (n_chunks * ic)               # two matmuls per token
    bytes_accessed = int(S_pad * H * (cds + ods)
                         + weight_passes * w_bytes + b_bytes)

    kernel = functools.partial(_mlp_kernel, w_resident=resident)

    out = pl.pallas_call(
        kernel,
        out_shape=jax.ShapeDtypeStruct((S_pad, H), out_dtype),
        grid_spec=pltpu.PrefetchScalarGridSpec(
            num_scalar_prefetch=0,
            grid=grid,
            in_specs=[
                pl.BlockSpec((tm, H), lambda i, j: (i, 0)),                   # x tile
                wgu_spec,                                                      # W_gate_up
                pl.BlockSpec((n_chunks, 1, 2 * ic), lambda i, j: (0, 0, 0)),   # b_gate_up (resident)
                wd_spec,                                                       # W_down
                pl.BlockSpec((1, H), lambda i, j: (0, 0)),                     # b_down
            ],
            out_specs=pl.BlockSpec((tm, H), lambda i, j: (i, 0)),
            scratch_shapes=[pltpu.VMEM((tm, H), jnp.float32)],
        ),
        compiler_params=pltpu.CompilerParams(
            dimension_semantics=("parallel", "arbitrary"),
            vmem_limit_bytes=vmem_limit),
        cost_estimate=pl.CostEstimate(
            flops=flops,
            transcendentals=S_pad * n_chunks * ic,
            bytes_accessed=bytes_accessed),
    )(xc, wgu, bgu, wd, bd)

    return out[:S]


def _reference(x, w_gate_up, b_gate_up, w_down, b_down):
    """Pure-JAX f32 reference mirroring the PyTorch forward."""
    x32 = x.astype(jnp.float32)
    gu = x32 @ w_gate_up.astype(jnp.float32).T + b_gate_up.astype(jnp.float32)
    I = gu.shape[-1] // 2
    gate, up = gu[:, :I], gu[:, I:]
    h = jax.nn.silu(gate) * up
    y = h @ w_down.astype(jnp.float32).T + b_down.astype(jnp.float32)
    return y.astype(x.dtype)


if __name__ == "__main__":
    def run_case(seq, hidden, inter, block_i, force_streamed):
        key = jax.random.PRNGKey(0)
        k_x, k_wgu, k_bgu, k_wd, k_bd = jax.random.split(key, 5)

        x = jax.random.normal(k_x, (seq, hidden), dtype=jnp.float32)
        w_gate_up = 0.05 * jax.random.normal(k_wgu, (2 * inter, hidden), dtype=jnp.float32)
        b_gate_up = 0.05 * jax.random.normal(k_bgu, (2 * inter,), dtype=jnp.float32)
        w_down = 0.05 * jax.random.normal(k_wd, (hidden, inter), dtype=jnp.float32)
        b_down = 0.05 * jax.random.normal(k_bd, (hidden,), dtype=jnp.float32)

        # Weight prep happens once, outside the per-call hot path.
        params = prepare_qwen2_5_vl_mlp_params(w_gate_up, b_gate_up, w_down, b_down,
                                               block_i=block_i)
        out = qwen2_5_vl_mlp(x, *params, _force_streamed=force_streamed)
        out = jax.block_until_ready(out)

        ref = _reference(x, w_gate_up, b_gate_up, w_down, b_down)
        assert out.shape == (seq, hidden) and out.dtype == x.dtype
        # bf16 MXU operands -> expected bf16-level error vs the f32 reference.
        assert jnp.allclose(out, ref, atol=3e-2, rtol=3e-2), (
            f"mismatch vs reference (seq={seq}, hidden={hidden}, inter={inter}, "
            f"streamed={force_streamed})")

    # Single chunk, weight-resident path (small synthetic config).
    run_case(seq=8, hidden=32, inter=64, block_i=DEFAULT_BLOCK_I, force_streamed=False)
    # Multi-chunk with I padding: exercise both the resident and streamed kernels.
    run_case(seq=40, hidden=128, inter=200, block_i=128, force_streamed=False)
    run_case(seq=40, hidden=128, inter=200, block_i=128, force_streamed=True)

    print("KERNEL_OK")
</pallas_src>

<mosaic_0001>
module attributes {stable_mosaic.version = 11 : i64} {
  func.func @_mlp_kernel(%arg0: i32, %arg1: i32, %arg2: memref<16x32xbf16, #tpu.memory_space<vmem>>, %arg3: memref<1x32x128xbf16, #tpu.memory_space<vmem>>, %arg4: memref<1x1x128xf32, #tpu.memory_space<vmem>>, %arg5: memref<1x64x32xbf16, #tpu.memory_space<vmem>>, %arg6: memref<1x32xf32, #tpu.memory_space<vmem>>, %arg7: memref<16x32xf32, #tpu.memory_space<vmem>>, %arg8: memref<16x32xf32, #tpu.memory_space<vmem>>) attributes {dimension_semantics = [#tpu.dimension_semantics<parallel>, #tpu.dimension_semantics<arbitrary>], iteration_bounds = array<i64: 1, 1>, scalar_prefetch = 0 : i64, scratch_operands = 1 : i64, tpu.core_type = #tpu.core_type<tc>, window_params = [{transform_indices = @transform_0, window_bounds = array<i64: 16, 32>}, {pipeline_mode = #tpu.pipeline_mode<synchronous>, transform_indices = @transform_1, window_bounds = array<i64: 1, 32, 128>}, {pipeline_mode = #tpu.pipeline_mode<synchronous>, transform_indices = @transform_2, window_bounds = array<i64: 1, 1, 128>}, {pipeline_mode = #tpu.pipeline_mode<synchronous>, transform_indices = @transform_3, window_bounds = array<i64: 1, 64, 32>}, {pipeline_mode = #tpu.pipeline_mode<synchronous>, transform_indices = @transform_4, window_bounds = array<i64: 1, 32>}, {transform_indices = @transform_5, window_bounds = array<i64: 16, 32>}]} {
    %c0_i32 = arith.constant 0 : i32
    %0 = arith.cmpi eq, %arg1, %c0_i32 : i32
    %1 = arith.extui %0 : i1 to i32
    %c0_i32_0 = arith.constant 0 : i32
    %2 = arith.cmpi ne, %1, %c0_i32_0 : i32
    scf.if %2 {
      %cst_16 = arith.constant 0.000000e+00 : f32
      %33 = vector.broadcast %cst_16 : f32 to vector<16x32xf32>
      %c0_17 = arith.constant 0 : index
      %c0_18 = arith.constant 0 : index
      %34 = vector.load %arg8[%c0_17, %c0_18] : memref<16x32xf32, #tpu.memory_space<vmem>>, vector<16x32xf32>
      tpu.vector_store %arg8[%c0_17, %c0_18], %33 {strides = array<i32>} : memref<16x32xf32, #tpu.memory_space<vmem>>, vector<16x32xf32>,
    } else {
    }
    %c0 = arith.constant 0 : index
    %c0_1 = arith.constant 0 : index
    %3 = vector.load %arg2[%c0, %c0_1] : memref<16x32xbf16, #tpu.memory_space<vmem>>, vector<16x32xbf16>
    %4 = arith.index_cast %arg1 : i32 to index
    %c0_2 = arith.constant 0 : index
    %c0_3 = arith.constant 0 : index
    %5 = vector.load %arg3[%4, %c0_2, %c0_3] : memref<1x32x128xbf16, #tpu.memory_space<vmem>>, vector<1x32x128xbf16>
    %6 = vector.shape_cast %5 : vector<1x32x128xbf16> to vector<32x128xbf16>
    %cst = arith.constant dense<0.000000e+00> : vector<16x128xf32>
    %7 = tpu.matmul %3, %6, %cst {dimension_numbers = #tpu.dot_dimension_numbers<[1], [0], [0], [1], [0, 0, 1, 1], [], []>} : vector<16x32xbf16>, vector<32x128xbf16>, vector<16x128xf32> -> vector<16x128xf32>
    %8 = arith.index_cast %arg1 : i32 to index
    %c0_4 = arith.constant 0 : index
    %c0_5 = arith.constant 0 : index
    %9 = vector.load %arg4[%8, %c0_4, %c0_5] : memref<1x1x128xf32, #tpu.memory_space<vmem>>, vector<1x1x128xf32>
    %10 = vector.shape_cast %9 : vector<1x1x128xf32> to vector<1x128xf32>
    %11 = vector.broadcast %10 : vector<1x128xf32> to vector<16x128xf32>
    %12 = arith.addf %7, %11 : vector<16x128xf32>
    %13 = vector.extract_strided_slice %12 {offsets = [0, 0], sizes = [16, 64], strides = [1, 1]} : vector<16x128xf32> to vector<16x64xf32>
    %14 = vector.extract_strided_slice %12 {offsets = [0, 64], sizes = [16, 64], strides = [1, 1]} : vector<16x128xf32> to vector<16x64xf32>
    %15 = arith.negf %13 : vector<16x64xf32>
    %16 = math.exp %15 : vector<16x64xf32>
    %cst_6 = arith.constant 1.000000e+00 : f32
    %17 = vector.broadcast %cst_6 : f32 to vector<16x64xf32>
    %18 = arith.addf %17, %16 : vector<16x64xf32>
    %19 = arith.divf %17, %18 : vector<16x64xf32>
    %20 = arith.mulf %13, %19 : vector<16x64xf32>
    %21 = arith.mulf %20, %14 : vector<16x64xf32>
    %c0_7 = arith.constant 0 : index
    %c0_8 = arith.constant 0 : index
    %22 = vector.load %arg8[%c0_7, %c0_8] : memref<16x32xf32, #tpu.memory_space<vmem>>, vector<16x32xf32>
    %23 = arith.truncf %21 : vector<16x64xf32> to vector<16x64xbf16>
    %24 = arith.index_cast %arg1 : i32 to index
    %c0_9 = arith.constant 0 : index
    %c0_10 = arith.constant 0 : index
    %25 = vector.load %arg5[%24, %c0_9, %c0_10] : memref<1x64x32xbf16, #tpu.memory_space<vmem>>, vector<1x64x32xbf16>
    %26 = vector.shape_cast %25 : vector<1x64x32xbf16> to vector<64x32xbf16>
    %cst_11 = arith.constant dense<0.000000e+00> : vector<16x32xf32>
    %27 = tpu.matmul %23, %26, %cst_11 {dimension_numbers = #tpu.dot_dimension_numbers<[1], [0], [0], [1], [0, 0, 1, 1], [], []>} : vector<16x64xbf16>, vector<64x32xbf16>, vector<16x32xf32> -> vector<16x32xf32>
    %28 = arith.addf %22, %27 : vector<16x32xf32>
    %c0_12 = arith.constant 0 : index
    %c0_13 = arith.constant 0 : index
    %29 = vector.load %arg8[%c0_12, %c0_13] : memref<16x32xf32, #tpu.memory_space<vmem>>, vector<16x32xf32>
    tpu.vector_store %arg8[%c0_12, %c0_13], %28 {strides = array<i32>} : memref<16x32xf32, #tpu.memory_space<vmem>>, vector<16x32xf32>,
    %c0_i32_14 = arith.constant 0 : i32
    %30 = arith.cmpi eq, %arg1, %c0_i32_14 : i32
    %31 = arith.extui %30 : i1 to i32
    %c0_i32_15 = arith.constant 0 : i32
    %32 = arith.cmpi ne, %31, %c0_i32_15 : i32
    scf.if %32 {
      %c0_16 = arith.constant 0 : index
      %c0_17 = arith.constant 0 : index
      %33 = vector.load %arg8[%c0_16, %c0_17] : memref<16x32xf32, #tpu.memory_space<vmem>>, vector<16x32xf32>
      %c0_18 = arith.constant 0 : index
      %c0_19 = arith.constant 0 : index
      %34 = vector.load %arg6[%c0_18, %c0_19] : memref<1x32xf32, #tpu.memory_space<vmem>>, vector<1x32xf32>
      %35 = vector.broadcast %34 : vector<1x32xf32> to vector<16x32xf32>
      %36 = arith.addf %33, %35 : vector<16x32xf32>
      %c0_20 = arith.constant 0 : index
      %c0_21 = arith.constant 0 : index
      %37 = vector.load %arg7[%c0_20, %c0_21] : memref<16x32xf32, #tpu.memory_space<vmem>>, vector<16x32xf32>
      tpu.vector_store %arg7[%c0_20, %c0_21], %36 {strides = array<i32>} : memref<16x32xf32, #tpu.memory_space<vmem>>, vector<16x32xf32>,
    } else {
    }
    return
  }
  func.func @transform_0(%arg0: i32, %arg1: i32) -> (i32, i32) {
    %c0_i32 = arith.constant 0 : i32
    %c0_i32_0 = arith.constant 0 : i32
    return %arg0, %c0_i32 : i32, i32
  }
  func.func @transform_1(%arg0: i32, %arg1: i32) -> (i32, i32, i32) {
    %c0_i32 = arith.constant 0 : i32
    %c0_i32_0 = arith.constant 0 : i32
    %c0_i32_1 = arith.constant 0 : i32
    %c0_i32_2 = arith.constant 0 : i32
    return %c0_i32, %c0_i32_0, %c0_i32_1 : i32, i32, i32
  }
  func.func @transform_2(%arg0: i32, %arg1: i32) -> (i32, i32, i32) {
    %c0_i32 = arith.constant 0 : i32
    %c0_i32_0 = arith.constant 0 : i32
    %c0_i32_1 = arith.constant 0 : i32
    %c0_i32_2 = arith.constant 0 : i32
    return %c0_i32, %c0_i32_0, %c0_i32_1 : i32, i32, i32
  }
  func.func @transform_3(%arg0: i32, %arg1: i32) -> (i32, i32, i32) {
    %c0_i32 = arith.constant 0 : i32
    %c0_i32_0 = arith.constant 0 : i32
    %c0_i32_1 = arith.constant 0 : i32
    %c0_i32_2 = arith.constant 0 : i32
    return %c0_i32, %c0_i32_0, %c0_i32_1 : i32, i32, i32
  }
  func.func @transform_4(%arg0: i32, %arg1: i32) -> (i32, i32) {
    %c0_i32 = arith.constant 0 : i32
    %c0_i32_0 = arith.constant 0 : i32
    %c0_i32_1 = arith.constant 0 : i32
    return %c0_i32, %c0_i32_0 : i32, i32
  }
  func.func @transform_5(%arg0: i32, %arg1: i32) -> (i32, i32) {
    %c0_i32 = arith.constant 0 : i32
    %c0_i32_0 = arith.constant 0 : i32
    return %arg0, %c0_i32 : i32, i32
  }
}

</mosaic_0001>

<bundles_post_ra>
// kernel: tpu_custom_call.1
= control target key start
LH: loop header
LB: loop body
LE: loop exit
PB: predicated region body
PF: predicated region fallthrough
CT: control target
= control target key end

     0   :  { %v336_v1 = vmov 0.0   ;;  %vm337_vm0 = vmmov 0   ;;  %vm26_vm1 = vcmask 261120   ;;  %s418_s0 = inlined_call_operand.vmem [shape: bf16[16,32], index: 0, kind: input, shape index: {}]   ;;  %s419_s1 = inlined_call_operand.vmem [shape: bf16[1,32,128], index: 1, kind: input, shape index: {}]   ;;  %s420_s2 = inlined_call_operand.vmem [shape: f32[1,1,128], index: 2, kind: input, shape index: {}]   ;;  %s421_s3 = inlined_call_operand.vmem [shape: bf16[1,64,32], index: 3, kind: input, shape index: {}]   ;;  %s422_s4 = inlined_call_operand.vmem [shape: f32[1,32], index: 4, kind: input, shape index: {}]   ;;  %s423_s5 = inlined_call_operand.hbm [shape: f32[16,32], index: 5, kind: output, shape index: {}]  }
   0x1   :  { %v297_v0 = vld [vmem:[%s419_s1] sm:$0xff]   ;;  %271 = vmatprep.subr.bf16.mxu0 %v336_v1  ;;  %279 = vmatprep.subr.bf16.mxu1 %v336_v1  ;;  %v298_v2 = vld [vmem:[%s419_s1 + $0x8] sm:$0xff]   ;;  %27 = vst.msk [vmem:[#allocation2] sm:$0xff] %vm26_vm1, %v336_v1  ;;  %28 = vst.msk [vmem:[#allocation2 + $0x8] sm:$0xff] %vm26_vm1, %v336_v1 }
   0x2   :  { %272 = vmatpush3.bf16.msra.mxu0 %v297_v0  ;;  %275 = vmatprep.mubr.msk.bf16.mxu0 %vm337_vm0, %v336_v1  ;;  %v299_v3 = vld [vmem:[%s418_s0] sm:$0xff]  }
   0x3   :  { %273 = vmatprep.subr.bf16.mxu0 %v336_v1  ;;  %287 = vmatprep.mubr.msk.bf16.mxu1 %vm337_vm0, %v336_v1 }
   0x6   :  { %274 = vmatpush3.bf16.msra.mxu0 %v298_v2 }
   0x7   :  { %10 = vsyncpa [#allocation4], 0  ;;  %v300_v4 = vld [vmem:[%s421_s3] sm:$0xff]   ;;  %v301_v5 = vld [vmem:[%s421_s3 + $0x8] sm:$0xff]   ;;  %s338_s7 = smov 64   ;;  %vm169_vm2 = vcmask 523264  }
   0x8   :  { %280 = vmatpush3.bf16.msra.mxu1 %v300_v4  ;;  %v302_v6 = vld [vmem:[%s421_s3 + $0x10] sm:$0xff]   ;;  %v303_v7 = vld [vmem:[%s421_s3 + $0x18] sm:$0xff]   ;;  %v250_v8 = vld [vmem:[%s420_s2] ss:$0 sm:$0xff]  ;;  %s339_s8 = smov [#allocation3]  }
   0x9   :  { %276 = vmatmul.mubr.msk.bf16.vlgmr.msra.gmra.mrb[0].mxu0 %vm26_vm1, %v299_v3  ;;  %281 = vmatprep.subr.bf16.mxu1 %v336_v1  ;;  %v131_v30 = vld [vmem:[#allocation2] sm:$0xff]  ;;  %v132_v32 = vld [vmem:[#allocation2 + $0x8] sm:$0xff]  ;;  %s239_s9 = sshll.u32 %s339_s8, 4  ;;  %s240_s9 = int_to_ptr.vmem [resolvable:$true] %s239_s9 }
   0xa   :  { %v262_v38 = vld [vmem:[%s422_s4] ss:$0 sm:$0xff]  ;;  %s312_s10 = scalar_lea.vmem %s240_s9, 256  ;;  %p317_p1 = scmp.lt.s32.totalorder %s240_s9, %s240_s9 }
   0xb   :  { %p313_p0 = scmp.ne.s32.totalorder %s240_s9, %s312_s10  ;;  %p318_p2 = scmp.lt.s32.totalorder %s312_s10, %s312_s10 }
   0xc   :  { %282 = vmatpush3.bf16.msra.mxu1 %v301_v5 }
   0xd   :  { %283 = vmatprep.subr.bf16.mxu1 %v336_v1  ;;  %p319_p3 = por %p318_p2, %p317_p1 }
   0xf   :  { %p320_p4 = pnand %p319_p3, %p313_p0 }
  0x10   :  { %284 = vmatpush3.bf16.msra.mxu1 %v302_v6 }
  0x11   :  { %285 = vmatprep.subr.bf16.mxu1 %v336_v1 }
  0x14   :  { %286 = vmatpush3.bf16.msra.mxu1 %v303_v7 }
  0xdc   :  { %v100_v9 = vpop.f32.mrb[0].mxu0 }
  0xdd   :  { %v101_v10 = vadd.f32 %v250_v8, %v100_v9  ;;  %v277_v11 = vpop.f32.mrb[1].mxu0 }
  0xde   :  { %v103_v12 = vpop.f32.mrb[2].mxu0 }
  0xdf   :  { %123 = vrot.lane.b32.xlu0 %v101_v10, %s338_s7  ;;  %v278_v13 = vpop.f32.mrb[3].mxu0  ;;  %v104_v14 = vadd.f32 %v250_v8, %v103_v12  ;;  %v255_v15 = vmul.f32 -1.442695, %v101_v10 }
  0xe1   :  { %v256_v16 = vmul.f32 -1.442695, %v104_v14  ;;  %304 = vpow2.f32 %v255_v15 }
  0xe3   :  { %125 = vrot.lane.b32.xlu0 %v104_v14, %s338_s7  ;;  %306 = vpow2.f32 %v256_v16 }
  0xeb   :  { %v305_v17 = vpop.eup %304 }
  0xec   :  { %v113_v19 = vadd.f32 1.0, %v305_v17 }
  0xed   :  { %v307_v18 = vpop.eup %306 }
  0xee   :  { %v114_v20 = vadd.f32 1.0, %v307_v18  ;;  %308 = vrcp.f32 %v113_v19 }
  0xf0   :  { %310 = vrcp.f32 %v114_v20 }
  0xf8   :  { %v309_v21 = vpop.eup %308 }
  0xf9   :  { %v119_v24 = vmul.f32 %v309_v21, %v101_v10 }
  0xfa   :  { %v311_v22 = vpop.eup %310 }
  0xfb   :  { %v120_v25 = vmul.f32 %v311_v22, %v104_v14 }
 0x151   :  { %v124_v23 = vpop.permute.xlu0 %123 }
 0x152   :  { %v129_v27 = vmul.f32 %v124_v23, %v119_v24 }
 0x155   :  { %v126_v26 = vpop.permute.xlu0 %125 }
 0x156   :  { %v130_v28 = vmul.f32 %v126_v26, %v120_v25 }
 0x158   :  { %v133_v29 = vpack.c.bf16 %v130_v28, %v129_v27 }
 0x15a   :  { %288 = vmatmul.mubr.msk.bf16.vlgmr.msra.gmra.mrb[0].mxu1 %vm169_vm2, %v133_v29 }
 0x22d   :  { %v207_v31 = vpop.f32.mrb[0].mxu1 }
 0x22e   :  { %v214_v33 = vadd.f32 %v207_v31, %v131_v30  ;;  %v289_v34 = vpop.f32.mrb[1].mxu1 }
 0x22f   :  { %v210_v35 = vpop.f32.mrb[2].mxu1 }
 0x230   :  { %216 = vst.msk [vmem:[#allocation2] sm:$0xff] %vm26_vm1, %v214_v33  ;;  %v215_v36 = vadd.f32 %v210_v35, %v132_v32  ;;  %v290_v37 = vpop.f32.mrb[3].mxu1 }
 0x232   :  { %217 = vst.msk [vmem:[#allocation2 + $0x8] sm:$0xff] %vm26_vm1, %v215_v36 }
 0x237   :  { %v221_v39 = vld [vmem:[#allocation2] sm:$0xff] }
 0x238   :  { %v230_v40 = vadd.f32 %v262_v38, %v221_v39 }
 0x239   :  { %v222_v41 = vld [vmem:[#allocation2 + $0x8] sm:$0xff] }
 0x23a   :  { %v231_v42 = vadd.f32 %v262_v38, %v222_v41  ;;  %232 = vst.msk [vmem:[#allocation3] sm:$0xff] %vm26_vm1, %v230_v40 }
 0x23c   :  { %233 = vst.msk [vmem:[#allocation3 + $0x8] sm:$0xff] %vm26_vm1, %v231_v42 }
 0x23d   :  { %323 = shalt.err (!%p320_p4)
}
 0x23e   :  { %s324_s12 = scalar_lea.hbm %s423_s5, 256 }
 0x23f   :  { %p325_p5 = scmp.ne.s32.totalorder %s423_s5, %s324_s12  ;;  %p328_p6 = scmp.lt.u32.totalorder %s324_s12, %s423_s5 }
 0x241   :  { %p330_p7 = pnand %p328_p6, %p325_p5 }
 0x243   :  { %333 = shalt.err (!%p330_p7)
}
 0x244   :  { %s340_s17 = smov 128   ;;  %s341_s18 = smov 8  }
 0x245   :  { %245 = dma.vmem_to_hbm [thread:$0]  %s240_s9, 256, %s423_s5, [#allocation4], %s340_s17, %s340_s17, %s341_s18  }
 0x246   :  { %334 = dma.done.wait [#allocation4], 256  }
 0x247   :  { %335 = vsyncadd [#allocation4], 4294967040 }
 0x248   :  { %249 = vsyncpa [#allocation4], 1 }

</bundles_post_ra>
